<compile_context>
chip_gen: v7x
topology: tpu7x:2x2x1
jax: 0.10.0
libtpu: 0.0.40
codegen_flags: <defaults>
</compile_context>

<pallas_src>
import jax
import jax.numpy as jnp
from jax.experimental import pallas as pl
from jax.experimental.pallas import tpu as pltpu

_ALIGN = 16                       # row-tile alignment: covers f32 (8,·) and bf16 (16,·)
_MIN_TILE_N = 16
_TARGET_X_BLOCK_BYTES = 4 << 20   # aim for >= ~4 MiB x blocks (HBM roofline plateau)

# ---------------------------------------------------------------------------
# Capability probes
# ---------------------------------------------------------------------------
_SINGLE_BUFFER_OK = None


def _single_buffer_ok():
    """True iff pl.Buffered(1) single-buffering of grid-invariant blocks works."""
    global _SINGLE_BUFFER_OK
    if _SINGLE_BUFFER_OK is not None:
        return _SINGLE_BUFFER_OK
    ok = False
    if hasattr(pl, "Buffered"):
        try:
            def probe_kernel(a_ref, c_ref, o_ref):
                o_ref[...] = a_ref[...] + c_ref[...]

            probe = pl.pallas_call(
                probe_kernel,
                out_shape=jax.ShapeDtypeStruct((16, 128), jnp.float32),
                grid_spec=pltpu.PrefetchScalarGridSpec(
                    num_scalar_prefetch=0,
                    grid=(2,),
                    in_specs=[
                        pl.BlockSpec((8, 128), lambda i: (i, 0)),
                        pl.BlockSpec((8, 128), lambda i: (0, 0),
                                     pipeline_mode=pl.Buffered(1)),
                    ],
                    out_specs=pl.BlockSpec((8, 128), lambda i: (i, 0)),
                ),
            )
            jax.block_until_ready(
                probe(jnp.zeros((16, 128), jnp.float32),
                      jnp.zeros((8, 128), jnp.float32)))
            ok = True
        except Exception:
            ok = False
    _SINGLE_BUFFER_OK = ok
    return ok


def _resident_spec(shape, index_map):
    """BlockSpec for a grid-invariant operand; single-buffered when supported."""
    if _single_buffer_ok():
        return pl.BlockSpec(shape, index_map, pipeline_mode=pl.Buffered(1))
    return pl.BlockSpec(shape, index_map)


def _vmem_capacity_bytes():
    """Per-core physical VMEM (v5e/v6e: 128 MiB, v7x: 64 MiB); conservative fallback."""
    try:
        cap = getattr(pltpu.get_tpu_info(), "vmem_capacity_bytes", None)
        if cap:
            return int(cap)
    except Exception:
        pass
    return 64 << 20


def _round_up(v, m):
    return ((v + m - 1) // m) * m


def _gate(y, z, approx):
    # ReLU(y) * sigmoid(z).  exp and the approx reciprocal both land on the EUP
    # slot, keeping the epilogue off the VALU critical path (matters on v5e).
    if approx:
        sig = pl.reciprocal(1.0 + jnp.exp(-z), approx=True)
    else:
        sig = jax.nn.sigmoid(z)
    return jnp.maximum(y, 0.0) * sig


# ---------------------------------------------------------------------------
# Fused gated 1x1-convolution + activation
# ---------------------------------------------------------------------------
def gated_convolution_activation(x, w, b, *, tile_n=None, tile_k=None,
                                 approx_sigmoid=True):
    """Fused NiN (1x1) convolution + gated activation over active-site features.

    out = ReLU(x @ W[:, :h] + b[:h]) * sigmoid(x @ W[:, h:] + b[h:]),  h = nOut//2

    x: (N, nIn) features (f32 or bf16); w: (nIn, nOut); b: (nOut,).
    Returns (N, nOut//2) in x.dtype.

    API contract / perf notes:
      * W is cast to x.dtype so the MXU sees a native matmul (bf16 inputs halve
        the dominant HBM read traffic); bias add and accumulation stay f32.
      * Narrow channels (nIn or nOut//2 << 128) pad the minor HBM dim to 128
        lanes and use masked output stores, so realized bandwidth is up to
        128/min(nIn, nOut//2) below roofline.  Prefer widths that are multiples
        of 128; pack channels caller-side if tiny widths matter.
      * approx_sigmoid=True uses the EUP approximate reciprocal (fast default);
        pass False for a bit-closer sigmoid.
    """
    N, nIn = x.shape
    nIn_w, nOut = w.shape
    assert nIn == nIn_w and nOut % 2 == 0
    half = nOut // 2
    out_dtype = x.dtype
    approx = bool(approx_sigmoid)

    w = w.astype(x.dtype)
    b_f32 = b.astype(jnp.float32).reshape(1, nOut)

    x_bytes = jnp.dtype(x.dtype).itemsize
    o_bytes = jnp.dtype(out_dtype).itemsize
    w_bytes = jnp.dtype(w.dtype).itemsize

    # ---- generation-aware VMEM budget --------------------------------------
    vmem_cap = _vmem_capacity_bytes()
    budget = (vmem_cap * 5) // 8                    # ~40 MiB (v7x), ~80 MiB (v5e/v6e)
    vmem_limit = int(min(vmem_cap, budget + (8 << 20)))

    wfac = 1 if _single_buffer_ok() else 2          # buffer count for resident operands

    # ---- K (nIn) tiling decision: only needed for very wide layers ----------
    full_w_bytes = nIn * nOut * w_bytes
    if tile_k is None:
        need_k = (nIn % 128 == 0) and (wfac * full_w_bytes > budget // 2)
    else:
        need_k = (nIn % 128 == 0) and (tile_k < nIn)
    if need_k:
        if tile_k is None:
            # Largest 128-multiple K tile whose double-buffered weight block
            # stays within half the budget.
            tile_k = 128 * max(1, (budget // 2) // max(2 * 128 * nOut * w_bytes, 1))
        tile_k = max(128, (tile_k // 128) * 128)
        tile_k = min(tile_k, nIn)
        while nIn % tile_k:          # exact K blocks only (no ragged reduction)
            tile_k -= 128
        grid_k = nIn // tile_k
    else:
        tile_k = nIn
        grid_k = 1

    use_fused = (half % 128 == 0) or need_k

    # ---- bytes-based row-tile selection under the VMEM budget ---------------
    per_row = 2 * tile_k * x_bytes + 2 * half * o_bytes      # double-buffered x / out
    if need_k:
        per_row += nOut * 4                                   # f32 accumulator scratch
        resident = 2 * tile_k * nOut * w_bytes + wfac * nOut * 4
    else:
        resident = wfac * (nIn * nOut * w_bytes + nOut * 4)
    if tile_n is None:
        rows_target = max(_TARGET_X_BLOCK_BYTES // max(tile_k * x_bytes, 1), _MIN_TILE_N)
        rows_budget = max((budget - resident) // max(per_row, 1), _MIN_TILE_N)
        tile_n = int(min(rows_target, rows_budget))
    tile_n = max(_MIN_TILE_N, (tile_n // _ALIGN) * _ALIGN)
    tile_n = min(tile_n, _round_up(N, _ALIGN))                # tiny N: one grid step
    grid_n = pl.cdiv(N, tile_n)
    # N need not divide tile_n: the ragged last block's extra input rows only
    # feed output rows that Pallas clips on writeback (row-wise op).

    cost = pl.CostEstimate(
        flops=2 * N * nIn * nOut,
        transcendentals=2 * N * half,
        bytes_accessed=(N * nIn * x_bytes + nIn * nOut * w_bytes
                        + nOut * 4 + N * half * o_bytes),
    )

    if not need_k and not use_fused:
        # --- half not 128-aligned: two dots against pre-split weight halves so
        #     the f32 accumulator is never lane-sliced at a non-aligned column.
        w_y, w_z = w[:, :half], w[:, half:]
        b_y, b_z = b_f32[:, :half], b_f32[:, half:]

        def kernel(x_ref, wy_ref, wz_ref, by_ref, bz_ref, o_ref):
            xt = x_ref[...]
            y = jnp.dot(xt, wy_ref[...], preferred_element_type=jnp.float32) + by_ref[...]
            z = jnp.dot(xt, wz_ref[...], preferred_element_type=jnp.float32) + bz_ref[...]
            o_ref[...] = _gate(y, z, approx).astype(o_ref.dtype)

        grid_spec = pltpu.PrefetchScalarGridSpec(
            num_scalar_prefetch=0,
            grid=(grid_n,),
            in_specs=[
                pl.BlockSpec((tile_n, nIn), lambda i: (i, 0)),      # x tile
                _resident_spec((nIn, half), lambda i: (0, 0)),      # W_y (resident)
                _resident_spec((nIn, half), lambda i: (0, 0)),      # W_z (resident)
                _resident_spec((1, half), lambda i: (0, 0)),        # b_y
                _resident_spec((1, half), lambda i: (0, 0)),        # b_z
            ],
            out_specs=pl.BlockSpec((tile_n, half), lambda i: (i, 0)),
        )
        operands = (x, w_y, w_z, b_y, b_z)
        dims = ("parallel",)

    elif not need_k:
        # --- half % 128 == 0: one MXU pass over x against the full weight; the
        #     accumulator column split at `half` is lane-aligned (relayout-free).
        def kernel(x_ref, w_ref, b_ref, o_ref):
            acc = jnp.dot(x_ref[...], w_ref[...], preferred_element_type=jnp.float32)
            acc = acc + b_ref[...]
            o_ref[...] = _gate(acc[:, :half], acc[:, half:], approx).astype(o_ref.dtype)

        grid_spec = pltpu.PrefetchScalarGridSpec(
            num_scalar_prefetch=0,
            grid=(grid_n,),
            in_specs=[
                pl.BlockSpec((tile_n, nIn), lambda i: (i, 0)),      # x tile
                _resident_spec((nIn, nOut), lambda i: (0, 0)),      # W (resident)
                _resident_spec((1, nOut), lambda i: (0, 0)),        # b
            ],
            out_specs=pl.BlockSpec((tile_n, half), lambda i: (i, 0)),
        )
        operands = (x, w, b_f32)
        dims = ("parallel",)

    else:
        # --- very wide nIn: stream the weight in (tile_k, nOut) blocks along an
        #     "arbitrary" K axis; accumulate into an f32 VMEM scratch.
        def kernel(x_ref, w_ref, b_ref, o_ref, acc_ref):
            @pl.when(pl.program_id(1) == 0)
            def _():
                acc_ref[...] = jnp.zeros_like(acc_ref)

            acc_ref[...] += jnp.dot(x_ref[...], w_ref[...],
                                    preferred_element_type=jnp.float32)

            @pl.when(pl.program_id(1) == pl.num_programs(1) - 1)
            def _():
                acc = acc_ref[...] + b_ref[...]
                o_ref[...] = _gate(acc[:, :half], acc[:, half:], approx).astype(o_ref.dtype)

        grid_spec = pltpu.PrefetchScalarGridSpec(
            num_scalar_prefetch=0,
            grid=(grid_n, grid_k),
            in_specs=[
                pl.BlockSpec((tile_n, tile_k), lambda i, k: (i, k)),   # x tile
                pl.BlockSpec((tile_k, nOut), lambda i, k: (k, 0)),     # W K-block
                _resident_spec((1, nOut), lambda i, k: (0, 0)),        # b
            ],
            out_specs=pl.BlockSpec((tile_n, half), lambda i, k: (i, 0)),
            scratch_shapes=[pltpu.VMEM((tile_n, nOut), jnp.float32)],
        )
        operands = (x, w, b_f32)
        dims = ("parallel", "arbitrary")

    return pl.pallas_call(
        kernel,
        out_shape=jax.ShapeDtypeStruct((N, half), out_dtype),
        grid_spec=grid_spec,
        compiler_params=pltpu.CompilerParams(
            dimension_semantics=dims,
            vmem_limit_bytes=vmem_limit,
        ),
        cost_estimate=cost,
    )(*operands)


def _reference(x, w, b):
    m = x.astype(jnp.float32) @ w.astype(jnp.float32) + b[None, :].astype(jnp.float32)
    half = m.shape[1] // 2
    return jnp.maximum(m[:, :half], 0.0) * jax.nn.sigmoid(m[:, half:])


if __name__ == "__main__":
    key = jax.random.PRNGKey(0)
    k1, k2, k3, k4, k5, k6 = jax.random.split(key, 6)

    # ---- case 1: toy widths, half=32 (not lane-aligned) -> split two-dot path.
    #      N=250 is deliberately not a tile multiple (exercises un-padded clipping).
    N1, nIn1, nOut1 = 250, 32, 64
    x1 = jax.random.normal(k1, (N1, nIn1), dtype=jnp.float32)
    w1 = jax.random.normal(k2, (nIn1, nOut1), dtype=jnp.float32) * (1.0 / nIn1) ** 0.5
    b1 = jax.random.normal(k3, (nOut1,), dtype=jnp.float32) * 0.1
    ref1 = _reference(x1, w1, b1)

    out_exact = jax.block_until_ready(
        gated_convolution_activation(x1, w1, b1, approx_sigmoid=False))
    assert out_exact.shape == (N1, nOut1 // 2)
    assert jnp.allclose(out_exact, ref1, atol=1e-5, rtol=1e-5)

    out_fast = jax.block_until_ready(gated_convolution_activation(x1, w1, b1))
    assert jnp.allclose(out_fast, ref1, atol=2e-2, rtol=2e-2)

    out_bf16 = jax.block_until_ready(
        gated_convolution_activation(x1.astype(jnp.bfloat16),
                                     w1.astype(jnp.bfloat16), b1))
    assert out_bf16.shape == (N1, nOut1 // 2) and out_bf16.dtype == jnp.bfloat16
    assert jnp.allclose(out_bf16.astype(jnp.float32), ref1, atol=1e-1, rtol=1e-1)

    # ---- case 2: half=128 (lane-aligned) -> fused single-dot path; tile_n=256
    #      with N=777 gives a multi-step grid with a ragged, clipped last block.
    N2, nIn2, nOut2 = 777, 256, 256
    x2 = jax.random.normal(k4, (N2, nIn2), dtype=jnp.float32)
    w2 = jax.random.normal(k5, (nIn2, nOut2), dtype=jnp.float32) * (1.0 / nIn2) ** 0.5
    b2v = jax.random.normal(k6, (nOut2,), dtype=jnp.float32) * 0.1
    ref2 = _reference(x2, w2, b2v)

    out2 = jax.block_until_ready(
        gated_convolution_activation(x2, w2, b2v, tile_n=256, approx_sigmoid=False))
    assert out2.shape == (N2, nOut2 // 2)
    assert jnp.allclose(out2, ref2, atol=1e-4, rtol=1e-4)

    # ---- case 3: forced K-tiling (wide-nIn fallback), grid=(4, 2) + f32 scratch.
    out3 = jax.block_until_ready(
        gated_convolution_activation(x2, w2, b2v, tile_n=256, tile_k=128,
                                     approx_sigmoid=False))
    assert jnp.allclose(out3, ref2, atol=1e-4, rtol=1e-4)

    print("KERNEL_OK")
</pallas_src>

<mosaic_0001>
module attributes {stable_mosaic.version = 11 : i64} {
  func.func @probe_kernel(%arg0: i32, %arg1: memref<8x128xf32, #tpu.memory_space<vmem>>, %arg2: memref<8x128xf32, #tpu.memory_space<vmem>>, %arg3: memref<8x128xf32, #tpu.memory_space<vmem>>) attributes {dimension_semantics = [#tpu.dimension_semantics<arbitrary>], iteration_bounds = array<i64: 2>, scalar_prefetch = 0 : i64, scratch_operands = 0 : i64, tpu.core_type = #tpu.core_type<tc>, window_params = [{transform_indices = @transform_0, window_bounds = array<i64: 8, 128>}, {pipeline_mode = #tpu.pipeline_mode<synchronous>, transform_indices = @transform_1, window_bounds = array<i64: 8, 128>}, {transform_indices = @transform_2, window_bounds = array<i64: 8, 128>}]} {
    %c0 = arith.constant 0 : index
    %c0_0 = arith.constant 0 : index
    %0 = vector.load %arg1[%c0, %c0_0] : memref<8x128xf32, #tpu.memory_space<vmem>>, vector<8x128xf32>
    %c0_1 = arith.constant 0 : index
    %c0_2 = arith.constant 0 : index
    %1 = vector.load %arg2[%c0_1, %c0_2] : memref<8x128xf32, #tpu.memory_space<vmem>>, vector<8x128xf32>
    %2 = arith.addf %0, %1 : vector<8x128xf32>
    %c0_3 = arith.constant 0 : index
    %c0_4 = arith.constant 0 : index
    %3 = vector.load %arg3[%c0_3, %c0_4] : memref<8x128xf32, #tpu.memory_space<vmem>>, vector<8x128xf32>
    tpu.vector_store %arg3[%c0_3, %c0_4], %2 {strides = array<i32>} : memref<8x128xf32, #tpu.memory_space<vmem>>, vector<8x128xf32>,
    return
  }
  func.func @transform_0(%arg0: i32) -> (i32, i32) {
    %c0_i32 = arith.constant 0 : i32
    %c0_i32_0 = arith.constant 0 : i32
    return %arg0, %c0_i32 : i32, i32
  }
  func.func @transform_1(%arg0: i32) -> (i32, i32) {
    %c0_i32 = arith.constant 0 : i32
    %c0_i32_0 = arith.constant 0 : i32
    %c0_i32_1 = arith.constant 0 : i32
    return %c0_i32, %c0_i32_0 : i32, i32
  }
  func.func @transform_2(%arg0: i32) -> (i32, i32) {
    %c0_i32 = arith.constant 0 : i32
    %c0_i32_0 = arith.constant 0 : i32
    return %arg0, %c0_i32 : i32, i32
  }
}

module attributes {stable_mosaic.version = 11 : i64} {
  func.func @kernel(%arg0: i32, %arg1: memref<256x32xf32, #tpu.memory_space<vmem>>, %arg2: memref<32x32xf32, #tpu.memory_space<vmem>>, %arg3: memref<32x32xf32, #tpu.memory_space<vmem>>, %arg4: memref<1x32xf32, #tpu.memory_space<vmem>>, %arg5: memref<1x32xf32, #tpu.memory_space<vmem>>, %arg6: memref<256x32xf32, #tpu.memory_space<vmem>>) attributes {dimension_semantics = [#tpu.dimension_semantics<parallel>], iteration_bounds = array<i64: 1>, scalar_prefetch = 0 : i64, scratch_operands = 0 : i64, tpu.core_type = #tpu.core_type<tc>, window_params = [{transform_indices = @transform_0, window_bounds = array<i64: 256, 32>}, {pipeline_mode = #tpu.pipeline_mode<synchronous>, transform_indices = @transform_1, window_bounds = array<i64: 32, 32>}, {pipeline_mode = #tpu.pipeline_mode<synchronous>, transform_indices = @transform_2, window_bounds = array<i64: 32, 32>}, {pipeline_mode = #tpu.pipeline_mode<synchronous>, transform_indices = @transform_3, window_bounds = array<i64: 1, 32>}, {pipeline_mode = #tpu.pipeline_mode<synchronous>, transform_indices = @transform_4, window_bounds = array<i64: 1, 32>}, {transform_indices = @transform_5, window_bounds = array<i64: 256, 32>}]} {
    %c0 = arith.constant 0 : index
    %c0_0 = arith.constant 0 : index
    %0 = vector.load %arg1[%c0, %c0_0] : memref<256x32xf32, #tpu.memory_space<vmem>>, vector<256x32xf32>
    %c0_1 = arith.constant 0 : index
    %c0_2 = arith.constant 0 : index
    %1 = vector.load %arg2[%c0_1, %c0_2] : memref<32x32xf32, #tpu.memory_space<vmem>>, vector<32x32xf32>
    %cst = arith.constant dense<0.000000e+00> : vector<256x32xf32>
    %2 = tpu.matmul %0, %1, %cst {dimension_numbers = #tpu.dot_dimension_numbers<[1], [0], [0], [1], [0, 0, 1, 1], [], []>} : vector<256x32xf32>, vector<32x32xf32>, vector<256x32xf32> -> vector<256x32xf32>
    %c0_3 = arith.constant 0 : index
    %c0_4 = arith.constant 0 : index
    %3 = vector.load %arg4[%c0_3, %c0_4] : memref<1x32xf32, #tpu.memory_space<vmem>>, vector<1x32xf32>
    %4 = vector.broadcast %3 : vector<1x32xf32> to vector<256x32xf32>
    %5 = arith.addf %2, %4 : vector<256x32xf32>
    %c0_5 = arith.constant 0 : index
    %c0_6 = arith.constant 0 : index
    %6 = vector.load %arg3[%c0_5, %c0_6] : memref<32x32xf32, #tpu.memory_space<vmem>>, vector<32x32xf32>
    %cst_7 = arith.constant dense<0.000000e+00> : vector<256x32xf32>
    %7 = tpu.matmul %0, %6, %cst_7 {dimension_numbers = #tpu.dot_dimension_numbers<[1], [0], [0], [1], [0, 0, 1, 1], [], []>} : vector<256x32xf32>, vector<32x32xf32>, vector<256x32xf32> -> vector<256x32xf32>
    %c0_8 = arith.constant 0 : index
    %c0_9 = arith.constant 0 : index
    %8 = vector.load %arg5[%c0_8, %c0_9] : memref<1x32xf32, #tpu.memory_space<vmem>>, vector<1x32xf32>
    %9 = vector.broadcast %8 : vector<1x32xf32> to vector<256x32xf32>
    %10 = arith.addf %7, %9 : vector<256x32xf32>
    %11 = arith.negf %10 : vector<256x32xf32>
    %12 = math.exp %11 : vector<256x32xf32>
    %cst_10 = arith.constant 1.000000e+00 : f32
    %13 = vector.broadcast %cst_10 : f32 to vector<256x32xf32>
    %14 = arith.addf %13, %12 : vector<256x32xf32>
    %15 = arith.divf %13, %14 : vector<256x32xf32>
    %cst_11 = arith.constant 0.000000e+00 : f32
    %16 = vector.broadcast %cst_11 : f32 to vector<256x32xf32>
    %17 = arith.maximumf %5, %16 : vector<256x32xf32>
    %18 = arith.mulf %17, %15 : vector<256x32xf32>
    %c0_12 = arith.constant 0 : index
    %c0_13 = arith.constant 0 : index
    %19 = vector.load %arg6[%c0_12, %c0_13] : memref<256x32xf32, #tpu.memory_space<vmem>>, vector<256x32xf32>
    tpu.vector_store %arg6[%c0_12, %c0_13], %18 {strides = array<i32>} : memref<256x32xf32, #tpu.memory_space<vmem>>, vector<256x32xf32>,
    return
  }
  func.func @transform_0(%arg0: i32) -> (i32, i32) {
    %c0_i32 = arith.constant 0 : i32
    %c0_i32_0 = arith.constant 0 : i32
    return %arg0, %c0_i32 : i32, i32
  }
  func.func @transform_1(%arg0: i32) -> (i32, i32) {
    %c0_i32 = arith.constant 0 : i32
    %c0_i32_0 = arith.constant 0 : i32
    %c0_i32_1 = arith.constant 0 : i32
    return %c0_i32, %c0_i32_0 : i32, i32
  }
  func.func @transform_2(%arg0: i32) -> (i32, i32) {
    %c0_i32 = arith.constant 0 : i32
    %c0_i32_0 = arith.constant 0 : i32
    %c0_i32_1 = arith.constant 0 : i32
    return %c0_i32, %c0_i32_0 : i32, i32
  }
  func.func @transform_3(%arg0: i32) -> (i32, i32) {
    %c0_i32 = arith.constant 0 : i32
    %c0_i32_0 = arith.constant 0 : i32
    %c0_i32_1 = arith.constant 0 : i32
    return %c0_i32, %c0_i32_0 : i32, i32
  }
  func.func @transform_4(%arg0: i32) -> (i32, i32) {
    %c0_i32 = arith.constant 0 : i32
    %c0_i32_0 = arith.constant 0 : i32
    %c0_i32_1 = arith.constant 0 : i32
    return %c0_i32, %c0_i32_0 : i32, i32
  }
  func.func @transform_5(%arg0: i32) -> (i32, i32) {
    %c0_i32 = arith.constant 0 : i32
    %c0_i32_0 = arith.constant 0 : i32
    return %arg0, %c0_i32 : i32, i32
  }
}

</mosaic_0001>

<bundles_post_ra>
// kernel: tpu_custom_call.1
= control target key start
LH: loop header
LB: loop body
LE: loop exit
PB: predicated region body
PF: predicated region fallthrough
CT: control target
= control target key end

     0   :  { %7 = vsyncpa [#allocation3], 0  ;;  %s690_s0 = inlined_call_operand.hbm [shape: f32[16,128], index: 0, kind: input, shape index: {}]   ;;  %s691_s1 = inlined_call_operand.hbm [shape: f32[8,128], index: 1, kind: input, shape index: {}]   ;;  %s692_s2 = inlined_call_operand.hbm [shape: f32[16,128], index: 2, kind: output, shape index: {}]  }
   0x1   :  { %9 = vsyncpa [#allocation3 + $0x1], 0 }
   0x2   :  { %10 = vsyncpa [#allocation6], 0 }
   0x3   :  { %11 = vsyncpa [#allocation4], 0 }
   0x4   :  { %13 = vsyncpa [#allocation4 + $0x1], 0  ;;  %s489_s9 = smov 0   ;;  %s491_s10 = smov 0  }
   0x5   :  { %s493_s11 = smov 0   ;;  %s495_s12 = smov 0  }
   0x6 LB: > { %s510_s13 = sadd.s32 4294967295, %s469_s12   ;;  %s270_s14 = sadd.s32 4294967294, %s469_s12   ;;  %s469_s12 = sphi %s495_s12, %s716_s12   ;;  %s465_s11 = sphi %s493_s11, %s715_s11   ;;  %s461_s10 = sphi %s491_s10, %s714_s10   ;;  %s457_s9 = sphi %s489_s9, %s713_s9  }
   0x7   : > { %p39_p0 = scmp.ne.s32.totalorder %s461_s10, %s457_s9  ;;  %p693_p1 = scmp.eq.s32.totalorder %s510_s13, 0 }
   0x8   : > { %p90_p3 = scmp.eq.s32.totalorder %s270_s14, 1  ;;  %p271_p5 = scmp.ge.s32.totalorder %s469_s12, 1 }
   0x9   : > { %p519_p4 = por %p693_p1, %p39_p0  ;;  %p97_p7 = scmp.lt.s32.totalorder %s469_s12, 3 }
   0xa   : > { %p524_p6 = por %p90_p3, %p39_p0  ;;  %s471_s18 = smov [#allocation5]  }
   0xb   : > { %s696_s15 = scalar_select %p519_p4, 1, 0 }
   0xc   : > { %s697_s16 = scalar_select %p524_p6, 1, 0 }
   0xd   : > { %p529_p8 = pnand %p271_p5, %p97_p7  ;;  %s110_s19 = sshll.u32 %s471_s18, 4  ;;  %s111_s19 = int_to_ptr.vmem [resolvable:$true] %s110_s19 }
   0xe   : > { %s537_s20 = sadd.s32 1, %s469_s12   ;;  %s26_s24 = sadd.s32 1, %s465_s11 }
   0xf   : > { %s698_s17 = scalar_select %p529_p8, 1, 0 }
  0x10   : > { %p292_p10 = pneg %p529_p8  ;;  %s23_s22 = ssub.s32 %s469_s12, %s537_s20 }
  0x11   : > { %p547_p12 = scmp.eq.s32.totalorder %s23_s22, 0  ;;  %s341_s27 = scalar_lea.hbm %s691_s1, 128 }
  0x12   : > { %p541_p11 = pnand %p292_p10, %p693_p1  ;;  %p342_p0 = scmp.ne.s32.totalorder %s691_s1, %s341_s27 }
  0x13   : > { %s700_s23 = scalar_select %p547_p12, 1, 0 }
  0x14   : > { %p343_p3 = pneg %p541_p11  ;;  %p348_p10 = scmp.lt.u32.totalorder %s341_s27, %s691_s1 }
  0x16   : > { %p344_p5 = pnand %p343_p3, %p342_p0 }
  0x18   : > { %p345_p7 = pneg %p344_p5 }
  0x1a   : > { %p350_p9 = pnand %p348_p10, %p345_p7 }
  0x1c   : > { %353 = shalt.err (!%p350_p9)
}
  0x1d   : > { %s354_s4 = scalar_lea.vmem %s111_s19, 128  ;;  %p362_p6 = scmp.lt.s32.totalorder %s111_s19, %s111_s19 }
  0x1e   : > { %p355_p1 = scmp.ne.s32.totalorder %s111_s19, %s354_s4  ;;  %p363_p4 = scmp.lt.s32.totalorder %s354_s4, %s354_s4 }
  0x20   : > { %p357_p2 = pnand %p355_p1, %p343_p3  ;;  %p364_p8 = por %p363_p4, %p362_p6 }
  0x22   : > { %p358_p13 = pneg %p357_p2 }
  0x24   : > { %p365_p12 = pnand %p364_p8, %p358_p13 }
  0x26   : > { %368 = shalt.err (!%p365_p12)
}
  0x27   : > { %295 = dma.hbm_to_vmem [thread:$0]  (!%p541_p11), %s691_s1, 128, %s111_s19, [#allocation6]  }
  0x28   : > { %p701_p1 = scmp.ne.s32.totalorder %s700_s23, 0  ;;  %p34_p2 = scmp.eq.s32.totalorder %s469_s12, 0 }
  0x29   : > { %p702_p4 = scmp.ne.s32.totalorder %s465_s11, %s461_s10  ;;  %p703_p6 = scmp.eq.s32.totalorder %s510_s13, 1 }
  0x2a   : > { %s573_s7 = scalar_select %p701_p1, %s465_s11, %s26_s24  }
  0x2b   : > { %p581_p8 = por %p703_p6, %p702_p4  ;;  %p305_p9 = scmp.lt.s32.totalorder %s469_s12, 2 }
  0x2c   : > { %s121_s14 = sand.u32 1, %s465_s11   ;;  %p705_p12 = pmov %p702_p4 }
  0x2d   : > { %s274_s18 = sshll.u32 %s121_s14, 3  ;;  %s275_s21 = sshll.u32 %s469_s12, 7 }
  0x2e   : > { %p35_p13 = por %p34_p2, %p705_p12  ;;  %s594_s19 = scalar_lea.hbm %s690_s0, %s275_s21 }
  0x2f   : > { %s125_s23 = scalar_lea.vmem [#allocation2], %s274_s18  ;;  %s122_s27 = scalar_lea.sflag [#allocation3], %s121_s14 }
  0x30   : > { %s132_s24 = sshll.u32 %s125_s23, 4  ;;  %p596_p11 = pnand %p305_p9, %p35_p13  ;;  %s600_s24 = int_to_ptr.vmem [resolvable:$true] %s132_s24 }
  0x31   : > { %s369_s28 = scalar_lea.hbm %s594_s19, 128  ;;  %s374_s3 = scalar_lea.hbm %s690_s0, 256 }
  0x32   : > { %p370_p0 = scmp.ne.s32.totalorder %s594_s19, %s369_s28  ;;  %p371_p3 = pneg %p596_p11 }
  0x33   : > { %p375_p10 = scmp.lt.u32.totalorder %s594_s19, %s690_s0  ;;  %p376_p1 = scmp.lt.u32.totalorder %s374_s3, %s369_s28 }
  0x34   : > { %p372_p5 = pnand %p371_p3, %p370_p0  ;;  %p378_p4 = scmp.lt.u32.totalorder %s369_s28, %s594_s19 }
  0x35   : > { %p377_p2 = por %p376_p1, %p375_p10 }
  0x36   : > { %p373_p7 = pneg %p372_p5 }
  0x37   : > { %p379_p6 = por %p378_p4, %p377_p2 }
  0x39   : > { %p380_p9 = pnand %p379_p6, %p373_p7 }
  0x3b   : > { %383 = shalt.err (!%p380_p9)
}
  0x3c   : > { %s384_s6 = scalar_lea.vmem %s600_s24, 128  ;;  %s472_s14 = smov [#allocation2]  }
  0x3d   : > { %p385_p12 = scmp.ne.s32.totalorder %s600_s24, %s384_s6  ;;  %s389_s18 = sshll.u32 %s472_s14, 4  ;;  %s390_s18 = int_to_ptr.vmem [resolvable:$false] %s389_s18 }
  0x3e   : > { %s391_s21 = scalar_lea.vmem %s390_s18, 256  ;;  %p392_p5 = scmp.lt.s32.totalorder %s600_s24, %s390_s18 }
  0x3f   : > { %p387_p13 = pnand %p385_p12, %p371_p3  ;;  %p393_p10 = scmp.lt.s32.totalorder %s391_s21, %s384_s6 }
  0x41   : > { %p388_p0 = pneg %p387_p13  ;;  %p394_p1 = por %p393_p10, %p392_p5 }
  0x43   : > { %p395_p2 = pnand %p394_p1, %p388_p0 }
  0x45   : > { %398 = shalt.err (!%p395_p2)
}
  0x46   : > { %299 = dma.hbm_to_vmem [thread:$0]  (!%p596_p11), %s594_s19, 128, %s600_s24, %s122_s27  }
  0x47   : > { %p707_p7 = scmp.ne.s32.totalorder %s698_s17, 0 }
  0x48   : > { %s630_s22 = sand.u32 (!%p707_p7), 1, %s461_s10   ;;  %p708_p3 = scmp.ne.s32.totalorder (!%p707_p7), %s696_s15, 0 }
  0x49   : > { %141 = sbr.rel (%p707_p7) target bundleno = 109 (0x6d), region = 28  ;;  %s277_s25 = sshll.u32 (!%p707_p7), %s630_s22, 3 }
  0x4a   : > { %s144_s23 = scalar_lea.sflag (!%p707_p7), [#allocation3], %s630_s22  ;;  %s147_s28 = scalar_lea.vmem (!%p707_p7), [#allocation2], %s277_s25 }
  0x50   : > { %444 = dma.done.wait (%p708_p3), %s144_s23, 128  }
  0x51   : > { %446 = vsyncadd (%p708_p3), %s144_s23, 4294967168  ;;  %p709_p4 = scmp.eq.s32.totalorder %s510_s13, 0 }
  0x53   : > { %448 = dma.done.wait (%p709_p4), [#allocation6], 128   ;;  %p710_p11 = pmov %p709_p4 }
  0x54   : > { %s171_s17 = scalar_lea.vmem [#allocation7], %s277_s25  ;;  %s281_s24 = sshll.u32 %s510_s13, 7  ;;  %v172_v0 = vld [vmem:[%s147_s28] sm:$0xff]  ;;  %v173_v1 = vld [vmem:[#allocation5] sm:$0xff] }
  0x55   : > { %450 = vsyncadd (%p710_p11), [#allocation6], 4294967168  ;;  %s190_s19 = sshll.u32 %s171_s17, 4  ;;  %v174_v2 = vadd.f32 %v173_v1, %v172_v0  ;;  %s648_s27 = scalar_lea.hbm %s692_s2, %s281_s24  ;;  %s643_s19 = int_to_ptr.vmem [resolvable:$true] %s190_s19 }
  0x56   : > { %s177_s29 = scalar_lea.sflag [#allocation4], %s630_s22  ;;  %s399_s30 = scalar_lea.vmem %s643_s19, 128 }
  0x57   : > { %175 = vst [vmem:[%s171_s17] sm:$0xff] %v174_v2  ;;  %p400_p6 = scmp.ne.s32.totalorder %s643_s19, %s399_s30  ;;  %s473_s13 = smov [#allocation7]  }
  0x58   : > { %s403_s3 = sshll.u32 %s473_s13, 4  ;;  %s404_s3 = int_to_ptr.vmem [resolvable:$false] %s403_s3 }
  0x59   : > { %p401_p9 = pnand %p400_p6, %p581_p8  ;;  %s405_s4 = scalar_lea.vmem %s404_s3, 256 }
  0x5a   : > { %p406_p13 = scmp.lt.s32.totalorder %s643_s19, %s404_s3  ;;  %p407_p0 = scmp.lt.s32.totalorder %s405_s4, %s399_s30 }
  0x5b   : > { %p402_p12 = pneg %p401_p9 }
  0x5c   : > { %p408_p5 = por %p407_p0, %p406_p13 }
  0x5e   : > { %p409_p10 = pnand %p408_p5, %p402_p12 }
  0x60   : > { %412 = shalt.err (!%p409_p10)
}
  0x61   : > { %s413_s5 = scalar_lea.hbm %s648_s27, 128  ;;  %s417_s18 = scalar_lea.hbm %s692_s2, 256 }
  0x62   : > { %p414_p1 = scmp.ne.s32.totalorder %s648_s27, %s413_s5  ;;  %p418_p3 = scmp.lt.u32.totalorder %s648_s27, %s692_s2 }
  0x63   : > { %p419_p4 = scmp.lt.u32.totalorder %s417_s18, %s413_s5  ;;  %p421_p6 = scmp.lt.u32.totalorder %s413_s5, %s648_s27 }
  0x64   : > { %p415_p2 = pnand %p414_p1, %p581_p8 }
  0x65   : > { %p420_p11 = por %p419_p4, %p418_p3 }
  0x66   : > { %p416_p7 = pneg %p415_p2 }
  0x67   : > { %p422_p9 = por %p421_p6, %p420_p11 }
  0x69   : > { %p423_p12 = pnand %p422_p9, %p416_p7 }
  0x6b   : > { %426 = shalt.err (!%p423_p12)
}
  0x6c   : > { %290 = dma.vmem_to_hbm [thread:$0]  (%p581_p8), %s643_s19, 128, %s648_s27, %s177_s29  }
  0x6d PF: > { %s202_s25 = sand.u32 1, %s457_s9   ;;  %p711_p13 = scmp.ne.s32.totalorder %s697_s16, 0 }
  0x6e   : > { %p712_p0 = scmp.ge.s32.totalorder %s469_s12, 2  ;;  %s203_s23 = scalar_lea.sflag [#allocation4], %s202_s25 }
  0x70   : > { %p301_p5 = pnand %p712_p0, %p711_p13 }
  0x72   : > { %452 = dma.done.wait (!%p301_p5), %s203_s23, 128  }
  0x73   : > { %454 = vsyncadd (!%p301_p5), %s203_s23, 4294967168  ;;  %p16_p10 = scmp.ge.s32.totalorder %s537_s20, 4   ;;  %s713_s9 = smov %s461_s10 }
  0x74   : > { %s714_s10 = smov %s465_s11  ;;  %s715_s11 = smov %s573_s7 }
  0x75   : > { %s716_s12 = smov %s537_s20  ;;  %18 = sbr.rel (!%p16_p10) target bundleno = 6 (0x6), region = 77 }
  0x7c   :  { %208 = vsyncpa [#allocation3], 1 }
  0x7d   :  { %210 = vsyncpa [#allocation3 + $0x1], 1 }
  0x7e   :  { %211 = vsyncpa [#allocation6], 1 }
  0x7f   :  { %212 = vsyncpa [#allocation4], 1 }
  0x80   :  { %214 = vsyncpa [#allocation4 + $0x1], 1 }

// kernel: tpu_custom_call.1
= control target key start
LH: loop header
LB: loop body
LE: loop exit
PB: predicated region body
PF: predicated region fallthrough
CT: control target
= control target key end

     0   :  { %vm63_vm0 = vcmask 261120   ;;  %s1842_s2 = inlined_call_operand.vmem [shape: f32[32,32], index: 2, kind: input, shape index: {}]   ;;  %s1843_s0 = inlined_call_operand.vmem [shape: f32[250,32], index: 0, kind: input, shape index: {}]   ;;  %s1844_s1 = inlined_call_operand.vmem [shape: f32[32,32], index: 1, kind: input, shape index: {}]   ;;  %s1845_s4 = inlined_call_operand.vmem [shape: f32[1,32], index: 4, kind: input, shape index: {}]   ;;  %s1846_s3 = inlined_call_operand.vmem [shape: f32[1,32], index: 3, kind: input, shape index: {}]   ;;  %s1847_s5 = inlined_call_operand.vmem [shape: f32[250,32], index: 5, kind: output, shape index: {}]  }
   0x1   :  { %v385_v0 = vld [vmem:[%s1842_s2] sm:$0xff]  ;;  %v386_v1 = vld [vmem:[%s1842_s2 + $0x8] sm:$0xff]  ;;  %v387_v2 = vld [vmem:[%s1842_s2 + $0x10] sm:$0xff] }
   0x2   :  { %v1203_v3 = vpack.c.bf16 %v386_v1, %v385_v0  ;;  %v388_v4 = vld [vmem:[%s1842_s2 + $0x18] sm:$0xff]  ;;  %v20_v5 = vld [vmem:[%s1843_s0] sm:$0xff]  ;;  %v53_v8 = vld [vmem:[%s1844_s1 + $0x8] sm:$0xff] }
   0x3   :  { %v1207_v6 = vpack.c.bf16 %v388_v4, %v387_v2  ;;  %1147 = vmatprep.mubr.msk.f32.mxu1 %vm63_vm0, %v20_v5  ;;  %1091 = vmatprep.mubr.msk.f32.mxu0 %vm63_vm0, %v20_v5  ;;  %v52_v7 = vld [vmem:[%s1844_s1] sm:$0xff]  ;;  %v54_v10 = vld [vmem:[%s1844_s1 + $0x10] sm:$0xff]  ;;  %v55_v11 = vld [vmem:[%s1844_s1 + $0x18] sm:$0xff] }
   0x4   :  { %1204 = vmatprep.subr.bf16.mxu1 %v1203_v3  ;;  %v1195_v9 = vpack.c.bf16 %v53_v8, %v52_v7  ;;  %v1199_v12 = vpack.c.bf16 %v55_v11, %v54_v10  ;;  %v21_v13 = vld [vmem:[%s1843_s0 + $0x8] sm:$0xff]  ;;  %v22_v14 = vld [vmem:[%s1843_s0 + $0x10] sm:$0xff]  ;;  %v23_v15 = vld [vmem:[%s1843_s0 + $0x18] sm:$0xff] }
   0x5   :  { %1206 = vmatpush3.bf16.msra.mxu1 %v1203_v3  ;;  %v24_v16 = vld [vmem:[%s1843_s0 + $0x20] sm:$0xff]  ;;  %v25_v17 = vld [vmem:[%s1843_s0 + $0x28] sm:$0xff]  ;;  %v26_v18 = vld [vmem:[%s1843_s0 + $0x30] sm:$0xff] }
   0x6   :  { %1208 = vmatprep.subr.bf16.mxu1 %v1207_v6  ;;  %1196 = vmatprep.subr.bf16.mxu0 %v1195_v9  ;;  %v27_v19 = vld [vmem:[%s1843_s0 + $0x38] sm:$0xff]  ;;  %v28_v20 = vld [vmem:[%s1843_s0 + $0x40] sm:$0xff]  ;;  %v29_v21 = vld [vmem:[%s1843_s0 + $0x48] sm:$0xff] }
   0x7   :  { %1198 = vmatpush3.bf16.msra.mxu0 %v1195_v9  ;;  %v30_v22 = vld [vmem:[%s1843_s0 + $0x50] sm:$0xff]  ;;  %v31_v23 = vld [vmem:[%s1843_s0 + $0x58] sm:$0xff]  ;;  %v32_v24 = vld [vmem:[%s1843_s0 + $0x60] sm:$0xff] }
   0x8   :  { %1200 = vmatprep.subr.bf16.mxu0 %v1199_v12  ;;  %v33_v25 = vld [vmem:[%s1843_s0 + $0x68] sm:$0xff]  ;;  %v34_v26 = vld [vmem:[%s1843_s0 + $0x70] sm:$0xff]  ;;  %v35_v27 = vld [vmem:[%s1843_s0 + $0x78] sm:$0xff] }
   0x9   :  { %1210 = vmatpush3.bf16.msra.mxu1 %v1207_v6  ;;  %v36_v28 = vld [vmem:[%s1843_s0 + $0x80] sm:$0xff]  ;;  %v37_v29 = vld [vmem:[%s1843_s0 + $0x88] sm:$0xff]  ;;  %v38_v30 = vld [vmem:[%s1843_s0 + $0x90] sm:$0xff] }
   0xa   :  { %v39_v31 = vld [vmem:[%s1843_s0 + $0x98] sm:$0xff]  ;;  %v40_v32 = vld [vmem:[%s1843_s0 + $0xa0] sm:$0xff]  ;;  %v41_v33 = vld [vmem:[%s1843_s0 + $0xa8] sm:$0xff] }
   0xb   :  { %1202 = vmatpush3.bf16.msra.mxu0 %v1199_v12  ;;  %v42_v34 = vld [vmem:[%s1843_s0 + $0xb0] sm:$0xff]  ;;  %v43_v35 = vld [vmem:[%s1843_s0 + $0xb8] sm:$0xff]  ;;  %v44_v36 = vld [vmem:[%s1843_s0 + $0xc0] sm:$0xff] }
   0xc   :  { %1148 = vmatmul.mubr.msk.f32.vlgmr.msra.gmra.mrb[0].mxu1 %vm63_vm0, %v21_v13  ;;  %v45_v37 = vld [vmem:[%s1843_s0 + $0xc8] sm:$0xff]  ;;  %v46_v38 = vld [vmem:[%s1843_s0 + $0xd0] sm:$0xff]  ;;  %v47_v39 = vld [vmem:[%s1843_s0 + $0xd8] sm:$0xff] }
   0xd   :  { %1150 = vmatprep.mubr.msk.f32.mxu1 %vm63_vm0, %v22_v14  ;;  %v48_v40 = vld [vmem:[%s1843_s0 + $0xe0] sm:$0xff]  ;;  %v49_v41 = vld [vmem:[%s1843_s0 + $0xe8] sm:$0xff]  ;;  %v50_v42 = vld [vmem:[%s1843_s0 + $0xf0] sm:$0xff] }
   0xe   :  { %1092 = vmatmul.mubr.msk.f32.vlgmr.msra.gmra.mrb[0].mxu0 %vm63_vm0, %v21_v13  ;;  %v51_v43 = vld [vmem:[%s1843_s0 + $0xf8] sm:$0xff]  ;;  %v1556_v44 = vld [vmem:[%s1845_s4] ss:$0 sm:$0xff] }
   0xf   :  { %1094 = vmatprep.mubr.msk.f32.mxu0 %vm63_vm0, %v22_v14 }
  0x10   :  { %1151 = vmatmul.mubr.msk.f32.gmra.mrb[2].mxu1 %vm63_vm0, %v23_v15 }
  0x11   :  { %1153 = vmatprep.mubr.msk.f32.mxu1 %vm63_vm0, %v24_v16 }
  0x12   :  { %1095 = vmatmul.mubr.msk.f32.gmra.mrb[2].mxu0 %vm63_vm0, %v23_v15 }
  0x13   :  { %1097 = vmatprep.mubr.msk.f32.mxu0 %vm63_vm0, %v24_v16 }
  0x14   :  { %1154 = vmatmul.mubr.msk.f32.gmra.mrb[4].mxu1 %vm63_vm0, %v25_v17 }
  0x15   :  { %1156 = vmatprep.mubr.msk.f32.mxu1 %vm63_vm0, %v26_v18 }
  0x16   :  { %1098 = vmatmul.mubr.msk.f32.gmra.mrb[4].mxu0 %vm63_vm0, %v25_v17 }
  0x17   :  { %1100 = vmatprep.mubr.msk.f32.mxu0 %vm63_vm0, %v26_v18 }
  0x18   :  { %1157 = vmatmul.mubr.msk.f32.gmra.mrb[6].mxu1 %vm63_vm0, %v27_v19 }
  0x19   :  { %1159 = vmatprep.mubr.msk.f32.mxu1 %vm63_vm0, %v28_v20 }
  0x1a   :  { %1101 = vmatmul.mubr.msk.f32.gmra.mrb[6].mxu0 %vm63_vm0, %v27_v19  ;;  %v1576_v19 = vld [vmem:[%s1846_s3] ss:$0 sm:$0xff] }
  0x1b   :  { %1103 = vmatprep.mubr.msk.f32.mxu0 %vm63_vm0, %v28_v20 }
  0x1c   :  { %1160 = vmatmul.mubr.msk.f32.gmra.mrb[8].mxu1 %vm63_vm0, %v29_v21 }
  0x1d   :  { %1162 = vmatprep.mubr.msk.f32.mxu1 %vm63_vm0, %v30_v22 }
  0x1e   :  { %1104 = vmatmul.mubr.msk.f32.gmra.mrb[8].mxu0 %vm63_vm0, %v29_v21 }
  0x1f   :  { %1106 = vmatprep.mubr.msk.f32.mxu0 %vm63_vm0, %v30_v22 }
  0x20   :  { %1163 = vmatmul.mubr.msk.f32.gmra.mrb[10].mxu1 %vm63_vm0, %v31_v23 }
  0x21   :  { %1165 = vmatprep.mubr.msk.f32.mxu1 %vm63_vm0, %v32_v24 }
  0x22   :  { %1107 = vmatmul.mubr.msk.f32.gmra.mrb[10].mxu0 %vm63_vm0, %v31_v23 }
  0x23   :  { %1109 = vmatprep.mubr.msk.f32.mxu0 %vm63_vm0, %v32_v24 }
  0x24   :  { %1166 = vmatmul.mubr.msk.f32.gmra.mrb[12].mxu1 %vm63_vm0, %v33_v25 }
  0x25   :  { %1168 = vmatprep.mubr.msk.f32.mxu1 %vm63_vm0, %v34_v26 }
  0x26   :  { %1110 = vmatmul.mubr.msk.f32.gmra.mrb[12].mxu0 %vm63_vm0, %v33_v25 }
  0x27   :  { %1112 = vmatprep.mubr.msk.f32.mxu0 %vm63_vm0, %v34_v26 }
  0x28   :  { %1169 = vmatmul.mubr.msk.f32.gmra.mrb[14].mxu1 %vm63_vm0, %v35_v27 }
  0x29   :  { %1171 = vmatprep.mubr.msk.f32.mxu1 %vm63_vm0, %v36_v28 }
  0x2a   :  { %1113 = vmatmul.mubr.msk.f32.gmra.mrb[14].mxu0 %vm63_vm0, %v35_v27 }
  0x2b   :  { %1115 = vmatprep.mubr.msk.f32.mxu0 %vm63_vm0, %v36_v28 }
  0x2c   :  { %1172 = vmatmul.mubr.msk.f32.gmra.mrb[16].mxu1 %vm63_vm0, %v37_v29 }
  0x2d   :  { %1174 = vmatprep.mubr.msk.f32.mxu1 %vm63_vm0, %v38_v30 }
  0x2e   :  { %1116 = vmatmul.mubr.msk.f32.gmra.mrb[16].mxu0 %vm63_vm0, %v37_v29 }
  0x2f   :  { %1118 = vmatprep.mubr.msk.f32.mxu0 %vm63_vm0, %v38_v30 }
  0x30   :  { %1175 = vmatmul.mubr.msk.f32.gmra.mrb[18].mxu1 %vm63_vm0, %v39_v31 }
  0x31   :  { %1177 = vmatprep.mubr.msk.f32.mxu1 %vm63_vm0, %v40_v32 }
  0x32   :  { %1119 = vmatmul.mubr.msk.f32.gmra.mrb[18].mxu0 %vm63_vm0, %v39_v31 }
  0x33   :  { %1121 = vmatprep.mubr.msk.f32.mxu0 %vm63_vm0, %v40_v32 }
  0x34   :  { %1178 = vmatmul.mubr.msk.f32.gmra.mrb[20].mxu1 %vm63_vm0, %v41_v33 }
  0x35   :  { %1180 = vmatprep.mubr.msk.f32.mxu1 %vm63_vm0, %v42_v34 }
  0x36   :  { %1122 = vmatmul.mubr.msk.f32.gmra.mrb[20].mxu0 %vm63_vm0, %v41_v33 }
  0x37   :  { %1124 = vmatprep.mubr.msk.f32.mxu0 %vm63_vm0, %v42_v34 }
  0x38   :  { %1181 = vmatmul.mubr.msk.f32.gmra.mrb[22].mxu1 %vm63_vm0, %v43_v35 }
  0x39   :  { %1183 = vmatprep.mubr.msk.f32.mxu1 %vm63_vm0, %v44_v36 }
  0x3a   :  { %1125 = vmatmul.mubr.msk.f32.gmra.mrb[22].mxu0 %vm63_vm0, %v43_v35 }
  0x3b   :  { %1127 = vmatprep.mubr.msk.f32.mxu0 %vm63_vm0, %v44_v36 }
  0x3c   :  { %1184 = vmatmul.mubr.msk.f32.gmra.mrb[24].mxu1 %vm63_vm0, %v45_v37 }
  0x3d   :  { %1186 = vmatprep.mubr.msk.f32.mxu1 %vm63_vm0, %v46_v38 }
  0x3e   :  { %1128 = vmatmul.mubr.msk.f32.gmra.mrb[24].mxu0 %vm63_vm0, %v45_v37 }
  0x3f   :  { %1130 = vmatprep.mubr.msk.f32.mxu0 %vm63_vm0, %v46_v38 }
  0x40   :  { %1187 = vmatmul.mubr.msk.f32.gmra.mrb[26].mxu1 %vm63_vm0, %v47_v39 }
  0x41   :  { %1189 = vmatprep.mubr.msk.f32.mxu1 %vm63_vm0, %v48_v40 }
  0x42   :  { %1131 = vmatmul.mubr.msk.f32.gmra.mrb[26].mxu0 %vm63_vm0, %v47_v39 }
  0x43   :  { %1133 = vmatprep.mubr.msk.f32.mxu0 %vm63_vm0, %v48_v40 }
  0x44   :  { %1190 = vmatmul.mubr.msk.f32.gmra.mrb[28].mxu1 %vm63_vm0, %v49_v41 }
  0x45   :  { %1192 = vmatprep.mubr.msk.f32.mxu1 %vm63_vm0, %v50_v42 }
  0x46   :  { %1134 = vmatmul.mubr.msk.f32.gmra.mrb[28].mxu0 %vm63_vm0, %v49_v41 }
  0x47   :  { %1136 = vmatprep.mubr.msk.f32.mxu0 %vm63_vm0, %v50_v42 }
  0x48   :  { %1193 = vmatmul.mubr.msk.f32.gmra.mrb[30].mxu1 %vm63_vm0, %v51_v43 }
  0x4a   :  { %1137 = vmatmul.mubr.msk.f32.gmra.mrb[30].mxu0 %vm63_vm0, %v51_v43 }
  0xdf   :  { %v1149_v45 = vpop.f32.mrb[0].mxu1 }
  0xe0   :  { %v468_v46 = vadd.f32 %v1149_v45, %v1556_v44  ;;  %v462_v47 = vpop.f32.mrb[1].mxu1 }
  0xe1   :  { %v463_v48 = vadd.f32 %v1556_v44, %v462_v47  ;;  %v1093_v52 = vpop.f32.mrb[0].mxu0 }
  0xe2   :  { %v980_v49 = vmul.f32 -1.442695, %v468_v46  ;;  %v226_v55 = vpop.f32.mrb[1].mxu0  ;;  %v232_v28 = vadd.f32 %v1093_v52, %v1576_v19 }
  0xe3   :  { %v979_v50 = vmul.f32 -1.442695, %v463_v48  ;;  %v1152_v51 = vpop.f32.mrb[2].mxu1  ;;  %v227_v35 = vadd.f32 %v1576_v19, %v226_v55 }
  0xe4   :  { %1211 = vpow2.f32 %v980_v49  ;;  %v478_v53 = vadd.f32 %v1152_v51, %v1556_v44  ;;  %v472_v54 = vpop.f32.mrb[3].mxu1  ;;  %v814_v42 = vmax.f32 %v232_v28, 0.0 }
  0xe5   :  { %1213 = vpow2.f32 %v979_v50  ;;  %v473_v56 = vadd.f32 %v1556_v44, %v472_v54  ;;  %v1096_v60 = vpop.f32.mrb[2].mxu0  ;;  %v813_v51 = vmax.f32 %v227_v35, 0.0 }
  0xe6   :  { %v982_v57 = vmul.f32 -1.442695, %v478_v53  ;;  %v236_v63 = vpop.f32.mrb[3].mxu0  ;;  %v242_v38 = vadd.f32 %v1096_v60, %v1576_v19 }
  0xe7   :  { %v981_v58 = vmul.f32 -1.442695, %v473_v56  ;;  %v1155_v59 = vpop.f32.mrb[4].mxu1  ;;  %v237_v49 = vadd.f32 %v1576_v19, %v236_v63 }
  0xe8   :  { %1215 = vpow2.f32 %v982_v57  ;;  %v488_v61 = vadd.f32 %v1155_v59, %v1556_v44  ;;  %v482_v62 = vpop.f32.mrb[5].mxu1  ;;  %v816_v55 = vmax.f32 %v242_v38, 0.0 }
  0xe9   :  { %1217 = vpow2.f32 %v981_v58  ;;  %v483_v0 = vadd.f32 %v1556_v44, %v482_v62  ;;  %v1564_v4 = vpop.f32.mrb[4].mxu0 }
  0xea   :  { %v984_v1 = vmul.f32 -1.442695, %v488_v61  ;;  %v1567_v7 = vpop.f32.mrb[5].mxu0  ;;  %v252_v60 = vadd.f32 %v1564_v4, %v1576_v19 }
  0xeb   :  { %v983_v2 = vmul.f32 -1.442695, %v483_v0  ;;  %v1158_v3 = vpop.f32.mrb[6].mxu1  ;;  %v815_v0 = vmax.f32 %v237_v49, 0.0 }
  0xec   :  { %1219 = vpow2.f32 %v984_v1  ;;  %v498_v5 = vadd.f32 %v1158_v3, %v1556_v44  ;;  %v492_v6 = vpop.f32.mrb[7].mxu1 }
  0xed   :  { %1221 = vpow2.f32 %v983_v2  ;;  %v493_v8 = vadd.f32 %v1556_v44, %v492_v6  ;;  %v1570_v15 = vpop.f32.mrb[6].mxu0 }
  0xee   :  { %v1212_v9 = vpop.eup %1211  ;;  %v986_v10 = vmul.f32 -1.442695, %v498_v5  ;;  %v1578_v20 = vpop.f32.mrb[7].mxu0 }
  0xef   :  { %v1214_v11 = vpop.eup %1213  ;;  %v718_v12 = vadd.f32 1.0, %v1212_v9  ;;  %v985_v13 = vmul.f32 -1.442695, %v493_v8  ;;  %v1161_v14 = vpop.f32.mrb[8].mxu1  ;;  %v247_v9 = vadd.f32 %v1576_v19, %v1567_v7 }
  0xf0   :  { %v717_v16 = vadd.f32 1.0, %v1214_v11  ;;  %1223 = vpow2.f32 %v986_v10  ;;  %v508_v17 = vadd.f32 %v1161_v14, %v1556_v44  ;;  %v502_v18 = vpop.f32.mrb[9].mxu1 }
  0xf1   :  { %1225 = vrcp.f32 %v718_v12  ;;  %v503_v21 = vadd.f32 %v1556_v44, %v502_v18  ;;  %v1582_v29 = vpop.f32.mrb[8].mxu0  ;;  %v817_v28 = vmax.f32 %v247_v9, 0.0 }
  0xf2   :  { %v1216_v22 = vpop.eup %1215  ;;  %1227 = vrcp.f32 %v717_v16  ;;  %v988_v23 = vmul.f32 -1.442695, %v508_v17  ;;  %v1585_v33 = vpop.f32.mrb[9].mxu0  ;;  %v818_v16 = vmax.f32 %v252_v60, 0.0 }
  0xf3   :  { %v1218_v24 = vpop.eup %1217  ;;  %v720_v25 = vadd.f32 1.0, %v1216_v22  ;;  %1229 = vpow2.f32 %v985_v13  ;;  %v987_v26 = vmul.f32 -1.442695, %v503_v21  ;;  %v1164_v27 = vpop.f32.mrb[10].mxu1 }
  0xf4   :  { %v719_v30 = vadd.f32 1.0, %v1218_v24  ;;  %1231 = vpow2.f32 %v988_v23  ;;  %v518_v31 = vadd.f32 %v1164_v27, %v1556_v44  ;;  %v512_v32 = vpop.f32.mrb[11].mxu1  ;;  %v262_v24 = vadd.f32 %v1570_v15, %v1576_v19 }
  0xf5   :  { %1233 = vrcp.f32 %v720_v25  ;;  %v513_v34 = vadd.f32 %v1556_v44, %v512_v32  ;;  %v1590_v45 = vpop.f32.mrb[10].mxu0  ;;  %v257_v15 = vadd.f32 %v1576_v19, %v1578_v20 }
  0xf6   :  { %v1220_v36 = vpop.eup %1219  ;;  %1235 = vrcp.f32 %v719_v30  ;;  %v990_v37 = vmul.f32 -1.442695, %v518_v31  ;;  %v1594_v50 = vpop.f32.mrb[11].mxu0 }
  0xf7   :  { %v1222_v39 = vpop.eup %1221  ;;  %v722_v40 = vadd.f32 1.0, %v1220_v36  ;;  %1237 = vpow2.f32 %v987_v26  ;;  %v989_v41 = vmul.f32 -1.442695, %v513_v34  ;;  %v1167_v43 = vpop.f32.mrb[12].mxu1 }
  0xf8   :  { %v721_v46 = vadd.f32 1.0, %v1222_v39  ;;  %1239 = vpow2.f32 %v990_v37  ;;  %v528_v47 = vadd.f32 %v1167_v43, %v1556_v44  ;;  %v522_v48 = vpop.f32.mrb[13].mxu1  ;;  %v272_v39 = vadd.f32 %v1582_v29, %v1576_v19 }
  0xf9   :  { %1241 = vrcp.f32 %v722_v40  ;;  %v523_v52 = vadd.f32 %v1556_v44, %v522_v48  ;;  %v1599_v61 = vpop.f32.mrb[12].mxu0  ;;  %v820_v43 = vmax.f32 %v262_v24, 0.0 }
  0xfa   :  { %v1224_v53 = vpop.eup %1223  ;;  %1243 = vrcp.f32 %v721_v46  ;;  %v992_v54 = vmul.f32 -1.442695, %v528_v47  ;;  %v1602_v3 = vpop.f32.mrb[13].mxu0 }
  0xfb   :  { %v1226_v56 = vpop.eup %1225  ;;  %v724_v57 = vadd.f32 1.0, %v1224_v53  ;;  %1245 = vpow2.f32 %v989_v41  ;;  %v991_v58 = vmul.f32 -1.442695, %v523_v52  ;;  %v1170_v59 = vpop.f32.mrb[14].mxu1  ;;  %v267_v52 = vadd.f32 %v1576_v19, %v1585_v33 }
  0xfc   :  { %v1228_v62 = vpop.eup %1227  ;;  %v846_v63 = vmul.f32 %v1226_v56, %v814_v42  ;;  %1247 = vpow2.f32 %v992_v54  ;;  %v538_v1 = vadd.f32 %v1170_v59, %v1556_v44  ;;  %v532_v2 = vpop.f32.mrb[15].mxu1  ;;  %v819_v33 = vmax.f32 %v257_v15, 0.0 }
  0xfd   :  { %v1230_v5 = vpop.eup %1229  ;;  %1249 = vrcp.f32 %v724_v57  ;;  %v845_v6 = vmul.f32 %v1228_v62, %v813_v51  ;;  %v533_v8 = vadd.f32 %v1556_v44, %v532_v2  ;;  %v1615_v7 = vpop.f32.mrb[14].mxu0 }
  0xfe   :  { %v1232_v4 = vpop.eup %1231  ;;  %v723_v10 = vadd.f32 1.0, %v1230_v5  ;;  %878 = vst.msk [vmem:[%s1847_s5 + $0x8] sm:$0xff] %vm63_vm0, %v846_v63  ;;  %1251 = vpow2.f32 %v991_v58  ;;  %v994_v11 = vmul.f32 -1.442695, %v538_v1  ;;  %v1620_v25 = vpop.f32.mrb[15].mxu0  ;;  %v822_v58 = vmax.f32 %v272_v39, 0.0 }
  0xff   :  { %v1234_v12 = vpop.eup %1233  ;;  %v726_v13 = vadd.f32 1.0, %v1232_v4  ;;  %877 = vst.msk [vmem:[%s1847_s5] sm:$0xff] %vm63_vm0, %v845_v6  ;;  %v993_v14 = vmul.f32 -1.442695, %v533_v8  ;;  %v1173_v17 = vpop.f32.mrb[16].mxu1  ;;  %v821_v6 = vmax.f32 %v267_v52, 0.0  ;;  %v302_v52 = vadd.f32 %v1615_v7, %v1576_v19 }
 0x100   :  { %v1236_v18 = vpop.eup %1235  ;;  %1253 = vrcp.f32 %v723_v10  ;;  %v848_v21 = vmul.f32 %v1234_v12, %v816_v55  ;;  %v548_v22 = vadd.f32 %v1173_v17, %v1556_v44  ;;  %v542_v23 = vpop.f32.mrb[17].mxu1  ;;  %v282_v55 = vadd.f32 %v1590_v45, %v1576_v19 }
 0x101   :  { %v1238_v26 = vpop.eup %1237  ;;  %1255 = vrcp.f32 %v726_v13  ;;  %v847_v27 = vmul.f32 %v1236_v18, %v815_v0  ;;  %v543_v30 = vadd.f32 %v1556_v44, %v542_v23  ;;  %v1635_v40 = vpop.f32.mrb[16].mxu0  ;;  %v292_v17 = vadd.f32 %v1599_v61, %v1576_v19 }
 0x102   :  { %v1240_v31 = vpop.eup %1239  ;;  %v725_v32 = vadd.f32 1.0, %v1238_v26  ;;  %880 = vst.msk [vmem:[%s1847_s5 + $0x18] sm:$0xff] %vm63_vm0, %v848_v21  ;;  %1257 = vpow2.f32 %v994_v11  ;;  %v996_v34 = vmul.f32 -1.442695, %v548_v22  ;;  %v1638_v47 = vpop.f32.mrb[17].mxu0  ;;  %v824_v10 = vmax.f32 %v282_v55, 0.0 }
 0x103   :  { %v1242_v35 = vpop.eup %1241  ;;  %v728_v36 = vadd.f32 1.0, %v1240_v31  ;;  %879 = vst.msk [vmem:[%s1847_s5 + $0x10] sm:$0xff] %vm63_vm0, %v847_v27  ;;  %1259 = vpow2.f32 %v993_v14  ;;  %v995_v37 = vmul.f32 -1.442695, %v543_v30  ;;  %v1176_v38 = vpop.f32.mrb[18].mxu1  ;;  %v277_v11 = vadd.f32 %v1576_v19, %v1594_v50 }
 0x104   :  { %v1244_v41 = vpop.eup %1243  ;;  %1261 = vrcp.f32 %v725_v32  ;;  %v850_v42 = vmul.f32 %v1242_v35, %v818_v16  ;;  %v558_v20 = vadd.f32 %v1176_v38, %v1556_v44  ;;  %v552_v46 = vpop.f32.mrb[19].mxu1  ;;  %v287_v26 = vadd.f32 %v1576_v19, %v1602_v3 }
 0x105   :  { %v1246_v48 = vpop.eup %1245  ;;  %1263 = vrcp.f32 %v728_v36  ;;  %v849_v49 = vmul.f32 %v1244_v41, %v817_v28  ;;  %v553_v51 = vadd.f32 %v1556_v44, %v552_v46  ;;  %v1653_v60 = vpop.f32.mrb[18].mxu0  ;;  %v823_v3 = vmax.f32 %v277_v11, 0.0 }
 0x106   :  { %v1248_v29 = vpop.eup %1247  ;;  %v727_v53 = vadd.f32 1.0, %v1246_v48  ;;  %882 = vst.msk [vmem:[%s1847_s5 + $0x28] sm:$0xff] %vm63_vm0, %v850_v42  ;;  %1265 = vpow2.f32 %v996_v34  ;;  %v998_v54 = vmul.f32 -1.442695, %v558_v20  ;;  %v1656_v2 = vpop.f32.mrb[19].mxu0  ;;  %v826_v36 = vmax.f32 %v292_v17, 0.0 }
 0x107   :  { %v1250_v56 = vpop.eup %1249  ;;  %v730_v57 = vadd.f32 1.0, %v1248_v29  ;;  %881 = vst.msk [vmem:[%s1847_s5 + $0x20] sm:$0xff] %vm63_vm0, %v849_v49  ;;  %1267 = vpow2.f32 %v995_v37  ;;  %v1179_v59 = vpop.f32.mrb[20].mxu1  ;;  %v997_v0 = vmul.f32 -1.442695, %v553_v51  ;;  %v825_v42 = vmax.f32 %v287_v26, 0.0 }
 0x108   :  { %v1252_v62 = vpop.eup %1251  ;;  %1269 = vrcp.f32 %v727_v53  ;;  %v852_v63 = vmul.f32 %v1250_v56, %v820_v43  ;;  %v568_v1 = vadd.f32 %v1179_v59, %v1556_v44  ;;  %v562_v45 = vpop.f32.mrb[21].mxu1  ;;  %v297_v55 = vadd.f32 %v1576_v19, %v1620_v25 }
 0x109   :  { %1271 = vrcp.f32 %v730_v57  ;;  %v729_v5 = vadd.f32 1.0, %v1252_v62  ;;  %v563_v8 = vadd.f32 %v1556_v44, %v562_v45  ;;  %v1667_v18 = vpop.f32.mrb[20].mxu0  ;;  %v1703_v7 = vadd.f32 %v1635_v40, %v1576_v19 }
 0x10a   :  { %v1254_v9 = vpop.eup %1253  ;;  %884 = vst.msk [vmem:[%s1847_s5 + $0x38] sm:$0xff] %vm63_vm0, %v852_v63  ;;  %1273 = vpow2.f32 %v998_v54  ;;  %v1000_v4 = vmul.f32 -1.442695, %v568_v1  ;;  %v1672_v50 = vpop.f32.mrb[21].mxu0  ;;  %v828_v40 = vmax.f32 %v302_v52, 0.0 }
 0x10b   :  { %v1256_v12 = vpop.eup %1255  ;;  %1275 = vrcp.f32 %v729_v5  ;;  %v851_v13 = vmul.f32 %v1254_v9, %v819_v33  ;;  %v999_v14 = vmul.f32 -1.442695, %v563_v8  ;;  %v1182_v16 = vpop.f32.mrb[22].mxu1 }
 0x10c   :  { %v1258_v21 = vpop.eup %1257  ;;  %1277 = vpow2.f32 %v997_v0  ;;  %v854_v22 = vmul.f32 %v1256_v12, %v822_v58  ;;  %v578_v23 = vadd.f32 %v1182_v16, %v1556_v44  ;;  %v572_v24 = vpop.f32.mrb[23].mxu1 }
 0x10d   :  { %v1260_v27 = vpop.eup %1259  ;;  %v732_v28 = vadd.f32 1.0, %v1258_v21  ;;  %883 = vst.msk [vmem:[%s1847_s5 + $0x30] sm:$0xff] %vm63_vm0, %v851_v13  ;;  %1279 = vpow2.f32 %v1000_v4  ;;  %v573_v61 = vadd.f32 %v1556_v44, %v572_v24  ;;  %v1683_v38 = vpop.f32.mrb[22].mxu0  ;;  %v827_v13 = vmax.f32 %v297_v55, 0.0 }
 0x10e   :  { %v1262_v30 = vpop.eup %1261  ;;  %v731_v31 = vadd.f32 1.0, %v1260_v27  ;;  %886 = vst.msk [vmem:[%s1847_s5 + $0x48] sm:$0xff] %vm63_vm0, %v854_v22  ;;  %1281 = vpow2.f32 %v999_v14  ;;  %v1002_v32 = vmul.f32 -1.442695, %v578_v23  ;;  %v1686_v46 = vpop.f32.mrb[23].mxu0  ;;  %v830_v14 = vmax.f32 %v1703_v7, 0.0 }
 0x10f   :  { %v1264_v34 = vpop.eup %1263  ;;  %1283 = vrcp.f32 %v732_v28  ;;  %v853_v15 = vmul.f32 %v1262_v30, %v821_v6  ;;  %v1001_v35 = vmul.f32 -1.442695, %v573_v61  ;;  %v1185_v37 = vpop.f32.mrb[24].mxu1  ;;  %v322_v30 = vadd.f32 %v1653_v60, %v1576_v19 }
 0x110   :  { %v1266_v39 = vpop.eup %1265  ;;  %1285 = vrcp.f32 %v731_v31  ;;  %v856_v41 = vmul.f32 %v1264_v34, %v824_v10  ;;  %v588_v43 = vadd.f32 %v1185_v37, %v1556_v44  ;;  %v582_v20 = vpop.f32.mrb[25].mxu1  ;;  %v307_v10 = vadd.f32 %v1576_v19, %v1638_v47 }
 0x111   :  { %v1268_v48 = vpop.eup %1267  ;;  %v734_v49 = vadd.f32 1.0, %v1266_v39  ;;  %885 = vst.msk [vmem:[%s1847_s5 + $0x40] sm:$0xff] %vm63_vm0, %v853_v15  ;;  %1287 = vpow2.f32 %v1002_v32  ;;  %v583_v51 = vadd.f32 %v1556_v44, %v582_v20  ;;  %v1705_v59 = vpop.f32.mrb[24].mxu0  ;;  %v332_v39 = vadd.f32 %v1667_v18, %v1576_v19 }
 0x112   :  { %v1270_v29 = vpop.eup %1269  ;;  %v733_v53 = vadd.f32 1.0, %v1268_v48  ;;  %888 = vst.msk [vmem:[%s1847_s5 + $0x58] sm:$0xff] %vm63_vm0, %v856_v41  ;;  %1289 = vpow2.f32 %v1001_v35  ;;  %v1004_v54 = vmul.f32 -1.442695, %v588_v43  ;;  %v1708_v45 = vpop.f32.mrb[25].mxu0  ;;  %v829_v32 = vmax.f32 %v307_v10, 0.0 }
 0x113   :  { %v1272_v56 = vpop.eup %1271  ;;  %1291 = vrcp.f32 %v734_v49  ;;  %v855_v57 = vmul.f32 %v1270_v29, %v823_v3  ;;  %v1003_v33 = vmul.f32 -1.442695, %v583_v51  ;;  %v1188_v58 = vpop.f32.mrb[26].mxu1  ;;  %v832_v18 = vmax.f32 %v322_v30, 0.0 }
 0x114   :  { %v1274_v62 = vpop.eup %1273  ;;  %1293 = vrcp.f32 %v733_v53  ;;  %v858_v63 = vmul.f32 %v1272_v56, %v826_v36  ;;  %v598_v0 = vadd.f32 %v1188_v58, %v1556_v44  ;;  %v592_v1 = vpop.f32.mrb[27].mxu1  ;;  %v317_v36 = vadd.f32 %v1576_v19, %v1656_v2 }
 0x115   :  { %v1276_v25 = vpop.eup %1275  ;;  %v736_v5 = vadd.f32 1.0, %v1274_v62  ;;  %887 = vst.msk [vmem:[%s1847_s5 + $0x50] sm:$0xff] %vm63_vm0, %v855_v57  ;;  %1295 = vpow2.f32 %v1004_v54  ;;  %v593_v6 = vadd.f32 %v1556_v44, %v592_v1  ;;  %v1722_v17 = vpop.f32.mrb[26].mxu0  ;;  %v327_v55 = vadd.f32 %v1576_v19, %v1672_v50 }
 0x116   :  { %v1278_v8 = vpop.eup %1277  ;;  %890 = vst.msk [vmem:[%s1847_s5 + $0x68] sm:$0xff] %vm63_vm0, %v858_v63  ;;  %v857_v9 = vmul.f32 %v1276_v25, %v825_v42  ;;  %1297 = vpow2.f32 %v1003_v33  ;;  %v1006_v4 = vmul.f32 -1.442695, %v598_v0  ;;  %v1729_v26 = vpop.f32.mrb[27].mxu0  ;;  %v831_v33 = vmax.f32 %v317_v36, 0.0 }
 0x117   :  { %v1280_v11 = vpop.eup %1279  ;;  %1299 = vrcp.f32 %v736_v5  ;;  %v735_v12 = vadd.f32 1.0, %v1278_v8  ;;  %v1191_v16 = vpop.f32.mrb[28].mxu1  ;;  %v1005_v23 = vmul.f32 -1.442695, %v593_v6  ;;  %v834_v63 = vmax.f32 %v332_v39, 0.0 }
 0x118   :  { %v1282_v21 = vpop.eup %1281  ;;  %v738_v22 = vadd.f32 1.0, %v1280_v11  ;;  %889 = vst.msk [vmem:[%s1847_s5 + $0x60] sm:$0xff] %vm63_vm0, %v857_v9  ;;  %1301 = vpow2.f32 %v1006_v4  ;;  %v608_v47 = vadd.f32 %v1191_v16, %v1556_v44  ;;  %v602_v24 = vpop.f32.mrb[29].mxu1  ;;  %v342_v50 = vadd.f32 %v1683_v38, %v1576_v19 }
 0x119   :  { %v1284_v27 = vpop.eup %1283  ;;  %1303 = vrcp.f32 %v735_v12  ;;  %v737_v28 = vadd.f32 1.0, %v1282_v21  ;;  %v603_v61 = vadd.f32 %v1556_v44, %v602_v24  ;;  %v1738_v41 = vpop.f32.mrb[28].mxu0  ;;  %v833_v8 = vmax.f32 %v327_v55, 0.0 }
 0x11a   :  { %v1286_v31 = vpop.eup %1285  ;;  %1305 = vrcp.f32 %v738_v22  ;;  %v860_v3 = vmul.f32 %v1284_v27, %v828_v40  ;;  %v1008_v34 = vmul.f32 -1.442695, %v608_v47  ;;  %v1745_v49 = vpop.f32.mrb[29].mxu0  ;;  %v337_v9 = vadd.f32 %v1576_v19, %v1686_v46 }
 0x11b   :  { %v1288_v15 = vpop.eup %1287  ;;  %1307 = vrcp.f32 %v737_v28  ;;  %v859_v35 = vmul.f32 %v1286_v31, %v827_v13  ;;  %v1194_v37 = vpop.f32.mrb[30].mxu1  ;;  %v1007_v60 = vmul.f32 -1.442695, %v603_v61  ;;  %v352_v16 = vadd.f32 %v1705_v59, %v1576_v19 }
 0x11c   :  { %v1290_v42 = vpop.eup %1289  ;;  %v740_v43 = vadd.f32 1.0, %v1288_v15  ;;  %892 = vst.msk [vmem:[%s1847_s5 + $0x78] sm:$0xff] %vm63_vm0, %v860_v3  ;;  %1309 = vpow2.f32 %v1005_v23  ;;  %v618_v20 = vadd.f32 %v1194_v37, %v1556_v44  ;;  %v612_v48 = vpop.f32.mrb[31].mxu1  ;;  %v835_v22 = vmax.f32 %v337_v9, 0.0 }
 0x11d   :  { %v1292_v2 = vpop.eup %1291  ;;  %v739_v51 = vadd.f32 1.0, %v1290_v42  ;;  %891 = vst.msk [vmem:[%s1847_s5 + $0x70] sm:$0xff] %vm63_vm0, %v859_v35  ;;  %1311 = vpow2.f32 %v1008_v34  ;;  %v613_v52 = vadd.f32 %v1556_v44, %v612_v48  ;;  %v1754_v58 = vpop.f32.mrb[30].mxu0  ;;  %v347_v23 = vadd.f32 %v1576_v19, %v1708_v45 }
 0x11e   :  { %v1294_v29 = vpop.eup %1293  ;;  %1313 = vrcp.f32 %v740_v43  ;;  %v862_v53 = vmul.f32 %v1292_v2, %v830_v14  ;;  %v1010_v54 = vmul.f32 -1.442695, %v618_v20  ;;  %v376_v0 = vpop.f32.mrb[31].mxu0  ;;  %v836_v14 = vmax.f32 %v342_v50, 0.0 }
 0x11f   :  { %v1296_v56 = vpop.eup %1295  ;;  %1315 = vrcp.f32 %v739_v51  ;;  %v861_v57 = vmul.f32 %v1294_v29, %v829_v32  ;;  %v1009_v44 = vmul.f32 -1.442695, %v613_v52  ;;  %v1767_v5 = vadd.f32 %v1576_v19, %v376_v0 }
 0x120   :  { %v1298_v7 = vpop.eup %1297  ;;  %v742_v62 = vadd.f32 1.0, %v1296_v56  ;;  %894 = vst.msk [vmem:[%s1847_s5 + $0x88] sm:$0xff] %vm63_vm0, %v862_v53  ;;  %1317 = vpow2.f32 %v1007_v60  ;;  %v362_v28 = vadd.f32 %v1722_v17, %v1576_v19  ;;  %v838_v30 = vmax.f32 %v352_v16, 0.0 }
 0x121   :  { %v1300_v1 = vpop.eup %1299  ;;  %v741_v25 = vadd.f32 1.0, %v1298_v7  ;;  %893 = vst.msk [vmem:[%s1847_s5 + $0x80] sm:$0xff] %vm63_vm0, %v861_v57  ;;  %1319 = vpow2.f32 %v1010_v54  ;;  %v837_v32 = vmax.f32 %v347_v23, 0.0  ;;  %v357_v37 = vadd.f32 %v1576_v19, %v1729_v26 }
 0x122   :  { %v1302_v40 = vpop.eup %1301  ;;  %1321 = vrcp.f32 %v742_v62  ;;  %v864_v6 = vmul.f32 %v1300_v1, %v832_v18  ;;  %v840_v17 = vmax.f32 %v362_v28, 0.0  ;;  %v372_v43 = vadd.f32 %v1738_v41, %v1576_v19 }
 0x123   :  { %v1304_v4 = vpop.eup %1303  ;;  %1323 = vrcp.f32 %v741_v25  ;;  %v744_v10 = vadd.f32 1.0, %v1302_v40  ;;  %v839_v51 = vmax.f32 %v357_v37, 0.0  ;;  %v367_v41 = vadd.f32 %v1576_v19, %v1745_v49 }
 0x124   :  { %v1306_v11 = vpop.eup %1305  ;;  %896 = vst.msk [vmem:[%s1847_s5 + $0x98] sm:$0xff] %vm63_vm0, %v864_v6  ;;  %v863_v38 = vmul.f32 %v1304_v4, %v831_v33  ;;  %1325 = vpow2.f32 %v1009_v44  ;;  %v842_v18 = vmax.f32 %v372_v43, 0.0  ;;  %v382_v52 = vadd.f32 %v1754_v58, %v1576_v19 }
 0x125   :  { %v1308_v12 = vpop.eup %1307  ;;  %1327 = vrcp.f32 %v744_v10  ;;  %v866_v13 = vmul.f32 %v1306_v11, %v834_v63  ;;  %v841_v55 = vmax.f32 %v367_v41, 0.0  ;;  %v843_v58 = vmax.f32 %v1767_v5, 0.0 }
 0x126   :  { %v1310_v21 = vpop.eup %1309  ;;  %895 = vst.msk [vmem:[%s1847_s5 + $0x90] sm:$0xff] %vm63_vm0, %v863_v38  ;;  %v865_v46 = vmul.f32 %v1308_v12, %v833_v8  ;;  %v844_v57 = vmax.f32 %v382_v52, 0.0 }
 0x127   :  { %v1312_v47 = vpop.eup %1311  ;;  %v743_v24 = vadd.f32 1.0, %v1310_v21  ;;  %898 = vst.msk [vmem:[%s1847_s5 + $0xa8] sm:$0xff] %vm63_vm0, %v866_v13 }
 0x128   :  { %v1314_v27 = vpop.eup %1313  ;;  %v746_v59 = vadd.f32 1.0, %v1312_v47  ;;  %897 = vst.msk [vmem:[%s1847_s5 + $0xa0] sm:$0xff] %vm63_vm0, %v865_v46 }
 0x129   :  { %v1316_v61 = vpop.eup %1315  ;;  %1329 = vrcp.f32 %v743_v24  ;;  %v868_v45 = vmul.f32 %v1314_v27, %v836_v14 }
 0x12a   :  { %v1318_v31 = vpop.eup %1317  ;;  %1331 = vrcp.f32 %v746_v59  ;;  %v867_v3 = vmul.f32 %v1316_v61, %v835_v22 }
 0x12b   :  { %v1320_v34 = vpop.eup %1319  ;;  %v745_v15 = vadd.f32 1.0, %v1318_v31  ;;  %900 = vst.msk [vmem:[%s1847_s5 + $0xb8] sm:$0xff] %vm63_vm0, %v868_v45 }
 0x12c   :  { %v1322_v35 = vpop.eup %1321  ;;  %v748_v36 = vadd.f32 1.0, %v1320_v34  ;;  %899 = vst.msk [vmem:[%s1847_s5 + $0xb0] sm:$0xff] %vm63_vm0, %v867_v3 }
 0x12d   :  { %v1324_v39 = vpop.eup %1323  ;;  %1333 = vrcp.f32 %v745_v15  ;;  %v870_v42 = vmul.f32 %v1322_v35, %v838_v30 }
 0x12e   :  { %v1326_v60 = vpop.eup %1325  ;;  %1335 = vrcp.f32 %v748_v36  ;;  %v869_v20 = vmul.f32 %v1324_v39, %v837_v32 }
 0x12f   :  { %v1328_v48 = vpop.eup %1327  ;;  %v747_v2 = vadd.f32 1.0, %v1326_v60  ;;  %902 = vst.msk [vmem:[%s1847_s5 + $0xc8] sm:$0xff] %vm63_vm0, %v870_v42 }
 0x130   :  { %901 = vst.msk [vmem:[%s1847_s5 + $0xc0] sm:$0xff] %vm63_vm0, %v869_v20  ;;  %v872_v26 = vmul.f32 %v1328_v48, %v840_v17 }
 0x131   :  { %1337 = vrcp.f32 %v747_v2 }
 0x132   :  { %904 = vst.msk [vmem:[%s1847_s5 + $0xd8] sm:$0xff] %vm63_vm0, %v872_v26 }
 0x133   :  { %v1330_v29 = vpop.eup %1329 }
 0x134   :  { %v1332_v53 = vpop.eup %1331  ;;  %v871_v54 = vmul.f32 %v1330_v29, %v839_v51 }
 0x135   :  { %v874_v56 = vmul.f32 %v1332_v53, %v842_v18 }
 0x136   :  { %903 = vst.msk [vmem:[%s1847_s5 + $0xd0] sm:$0xff] %vm63_vm0, %v871_v54 }
 0x137   :  { %v1334_v49 = vpop.eup %1333  ;;  %906 = vst.msk [vmem:[%s1847_s5 + $0xe8] sm:$0xff] %vm63_vm0, %v874_v56 }
 0x138   :  { %v1336_v19 = vpop.eup %1335  ;;  %v873_v33 = vmul.f32 %v1334_v49, %v841_v55 }
 0x139   :  { %v876_v7 = vmul.f32 %v1336_v19, %v844_v57 }
 0x13a   :  { %905 = vst.msk [vmem:[%s1847_s5 + $0xe0] sm:$0xff] %vm63_vm0, %v873_v33 }
 0x13b   :  { %v1338_v62 = vpop.eup %1337  ;;  %908 = vst.msk [vmem:[%s1847_s5 + $0xf8] sm:$0xff] %vm63_vm0, %v876_v7 }
 0x13c   :  { %v875_v44 = vmul.f32 %v1338_v62, %v843_v58 }
 0x13e   :  { %907 = vst.msk [vmem:[%s1847_s5 + $0xf0] sm:$0xff] %vm63_vm0, %v875_v44 }

</bundles_post_ra>
